<compile_context>
chip_gen: v7x
topology: tpu7x:2x2x1
jax: 0.10.0
libtpu: 0.0.40
codegen_flags: <defaults>
</compile_context>

<pallas_src>
import functools

import jax
import jax.numpy as jnp
from jax import lax
from jax.experimental import pallas as pl
from jax.experimental.pallas import tpu as pltpu


def _cdiv(a: int, b: int) -> int:
    return -(-a // b)


# ---------------------------------------------------------------------------
# Forward kernels: out = x @ W^T   (x: (M, K), W: (N, K) PyTorch layout)
# ---------------------------------------------------------------------------
def _matmul_kernel_single_k(x_ref, w_ref, o_ref):
    # K fits in one tile: no accumulator, write the MXU result straight out.
    o_ref[...] = lax.dot_general(
        x_ref[...],
        w_ref[...],
        dimension_numbers=(((1,), (1,)), ((), ())),   # contract K with K (== x @ w.T)
        preferred_element_type=jnp.float32,
    ).astype(o_ref.dtype)


def _matmul_kernel_acc(x_ref, w_ref, o_ref, acc_ref, *, n_k: int, k_total: int, tk: int):
    k = pl.program_id(2)

    @pl.when(k == 0)
    def _():
        acc_ref[...] = jnp.zeros_like(acc_ref)

    xb = x_ref[...]
    wb = w_ref[...]
    if k_total % tk != 0:
        # Ragged K tail: boundary-block contents beyond K are unspecified, so
        # zero the out-of-range columns of BOTH operands before contracting
        # (0 * garbage could still be NaN if only one side were masked).
        valid = k_total - k * tk
        col = lax.broadcasted_iota(jnp.int32, (1, tk), 1)
        keep = col < valid
        xb = jnp.where(keep, xb, 0.0)
        wb = jnp.where(keep, wb, 0.0)

    acc_ref[...] += lax.dot_general(
        xb,
        wb,
        dimension_numbers=(((1,), (1,)), ((), ())),
        preferred_element_type=jnp.float32,
    )

    @pl.when(k == n_k - 1)
    def _():
        o_ref[...] = acc_ref[...].astype(o_ref.dtype)


def prototypes_forward(
    x,
    weight,
    *,
    tm: int = 512,
    tn: int = 1024,
    tk: int = 512,
    use_bf16_matmul=None,
):
    """Equivalent of Prototypes.forward: x @ weight.T (no bias).

    x:      (M, K)   activations
    weight: (N, K)   PyTorch nn.Linear weight layout (num_prototypes, output_dim)

    use_bf16_matmul: None = auto (only for large f32 problems). When enabled,
    MXU operands are cast to bf16 but accumulation stays f32 and the output
    keeps x's dtype.
    """
    M, K = x.shape
    N, Kw = weight.shape
    assert K == Kw, (K, Kw)
    out_dtype = x.dtype

    if use_bf16_matmul is None:
        use_bf16_matmul = (
            x.dtype == jnp.float32
            and weight.dtype == jnp.float32
            and min(M, N, K) >= 1024
        )
    if use_bf16_matmul:
        x = x.astype(jnp.bfloat16)
        weight = weight.astype(jnp.bfloat16)

    # bf16 packs two rows per sublane -> keep sublane tile dims 16-aligned.
    sub = 16 if x.dtype == jnp.bfloat16 else 8

    # Tile selection: full-dim blocks when the problem fits (always legal),
    # otherwise sublane/lane-aligned tiles; minimal/no host-side padding.
    tm_ = M if M <= tm else max(sub, (tm // sub) * sub)
    tn_ = N if N <= tn else max(128, (tn // 128) * 128)
    tk_ = K if K <= tk else max(128, (tk // 128) * 128)

    gm = _cdiv(M, tm_)
    gn = _cdiv(N, tn_)

    # v7x megacore: make sure the parallel (M, N) grid has >= 2 blocks when the
    # problem is splittable so both TensorCores get work.
    if gm * gn == 1:
        if tn_ >= 256 and tn_ % 256 == 0:
            tn_ //= 2
        elif tm_ >= 2 * sub and tm_ % (2 * sub) == 0:
            tm_ //= 2
        gm = _cdiv(M, tm_)
        gn = _cdiv(N, tn_)

    gk = _cdiv(K, tk_)

    in_bytes = jnp.dtype(x.dtype).itemsize
    out_bytes = jnp.dtype(out_dtype).itemsize

    cost = pl.CostEstimate(
        flops=2 * M * N * K,
        transcendentals=0,
        bytes_accessed=M * K * in_bytes + N * K * in_bytes + M * N * out_bytes,
    )

    # Actual VMEM need (double-buffered inputs/outputs + f32 accumulator) plus
    # margin, capped below v7x's 64 MiB physical VMEM.
    need = (
        2 * (tm_ * tk_ + tn_ * tk_) * in_bytes
        + 2 * tm_ * tn_ * out_bytes
        + tm_ * tn_ * 4
    )
    vmem_limit = int(min(48 << 20, max(need + (8 << 20), 24 << 20)))

    if gk == 1:
        # K fits one tile (tk_ == K): 2-D grid, no accumulator.
        return pl.pallas_call(
            _matmul_kernel_single_k,
            out_shape=jax.ShapeDtypeStruct((M, N), out_dtype),
            grid_spec=pltpu.PrefetchScalarGridSpec(
                num_scalar_prefetch=0,
                grid=(gm, gn),
                in_specs=[
                    pl.BlockSpec((tm_, tk_), lambda i, j: (i, 0)),
                    pl.BlockSpec((tn_, tk_), lambda i, j: (j, 0)),
                ],
                out_specs=pl.BlockSpec((tm_, tn_), lambda i, j: (i, j)),
            ),
            compiler_params=pltpu.CompilerParams(
                dimension_semantics=("parallel", "parallel"),
                vmem_limit_bytes=vmem_limit,
            ),
            cost_estimate=cost,
        )(x, weight)

    return pl.pallas_call(
        functools.partial(_matmul_kernel_acc, n_k=gk, k_total=K, tk=tk_),
        out_shape=jax.ShapeDtypeStruct((M, N), out_dtype),
        grid_spec=pltpu.PrefetchScalarGridSpec(
            num_scalar_prefetch=0,
            grid=(gm, gn, gk),
            in_specs=[
                pl.BlockSpec((tm_, tk_), lambda i, j, k: (i, k)),
                pl.BlockSpec((tn_, tk_), lambda i, j, k: (j, k)),
            ],
            out_specs=pl.BlockSpec((tm_, tn_), lambda i, j, k: (i, j)),
            scratch_shapes=[pltpu.VMEM((tm_, tn_), jnp.float32)],
        ),
        compiler_params=pltpu.CompilerParams(
            dimension_semantics=("parallel", "parallel", "arbitrary"),
            vmem_limit_bytes=vmem_limit,
        ),
        cost_estimate=cost,
    )(x, weight)


# ---------------------------------------------------------------------------
# normalize_prototypes(): row-wise L2 normalization of the weight matrix.
# (Functional: returns the new weight instead of in-place .copy_()).
# ---------------------------------------------------------------------------
def _l2_normalize_kernel(w_ref, o_ref):
    w = w_ref[...].astype(jnp.float32)
    sumsq = jnp.sum(w * w, axis=-1, keepdims=True)
    # 1 / max(||w||, 1e-12) == rsqrt(max(sumsq, 1e-24)); rsqrt runs on the EUP.
    inv = lax.rsqrt(jnp.maximum(sumsq, 1e-24))
    o_ref[...] = (w * inv).astype(o_ref.dtype)


def normalize_prototypes(weight, *, block_rows: int = 256):
    """Equivalent of Prototypes.normalize_prototypes (returns new weight)."""
    N, K = weight.shape
    # Keep each block around <= 2 MiB so input+output double buffers fit
    # comfortably in scoped VMEM even for very large prototype matrices.
    row_bytes = max(K * 4, 1)
    budget_rows = max(8, (((2 << 20) // row_bytes) // 8) * 8)
    tr = min(block_rows, budget_rows)
    if tr >= N:
        tr = N
    else:
        tr = max(8, (tr // 8) * 8)

    return pl.pallas_call(
        _l2_normalize_kernel,
        out_shape=jax.ShapeDtypeStruct((N, K), weight.dtype),
        grid_spec=pltpu.PrefetchScalarGridSpec(
            num_scalar_prefetch=0,
            grid=(_cdiv(N, tr),),
            in_specs=[pl.BlockSpec((tr, K), lambda i: (i, 0))],
            out_specs=pl.BlockSpec((tr, K), lambda i: (i, 0)),
        ),
        compiler_params=pltpu.CompilerParams(
            dimension_semantics=("parallel",),
            vmem_limit_bytes=32 << 20,
        ),
    )(weight)


# ---------------------------------------------------------------------------
# Pure-JAX references
# ---------------------------------------------------------------------------
def reference_forward(x, weight):
    return (x @ weight.T).astype(x.dtype)


def reference_normalize(weight):
    norm = jnp.sqrt(jnp.sum(weight.astype(jnp.float32) ** 2, axis=-1, keepdims=True))
    return (weight / jnp.maximum(norm, 1e-12)).astype(weight.dtype)


if __name__ == "__main__":
    key = jax.random.PRNGKey(0)

    # Module-native small shapes: batch=8, output_dim=32, num_prototypes=16.
    batch, output_dim, num_prototypes = 8, 32, 16
    key, kx, kw = jax.random.split(key, 3)
    x = jax.random.normal(kx, (batch, output_dim), jnp.float32)
    bound = 1.0 / (output_dim ** 0.5)
    weight = jax.random.uniform(
        kw, (num_prototypes, output_dim), jnp.float32, -bound, bound
    )

    fwd = jax.jit(prototypes_forward)
    out = fwd(x, weight)
    jax.block_until_ready(out)
    assert out.shape == (batch, num_prototypes), out.shape
    assert jnp.allclose(out, reference_forward(x, weight), atol=1e-4, rtol=1e-4)

    # normalize_prototypes followed by forward.
    w_norm = jax.jit(normalize_prototypes)(weight)
    jax.block_until_ready(w_norm)
    assert jnp.allclose(w_norm, reference_normalize(weight), atol=1e-5, rtol=1e-5)
    out_n = fwd(x, w_norm)
    jax.block_until_ready(out_n)
    assert jnp.allclose(out_n, reference_forward(x, w_norm), atol=1e-4, rtol=1e-4)

    # Medium, intentionally ragged case to exercise the tiled 3-D grid path:
    # partial M/N edge tiles and an in-kernel masked K tail (no host padding).
    M2, K2, N2 = 192, 320, 200
    key, kx2, kw2 = jax.random.split(key, 3)
    x2 = jax.random.normal(kx2, (M2, K2), jnp.float32)
    w2 = jax.random.normal(kw2, (N2, K2), jnp.float32) * (1.0 / (K2 ** 0.5))
    fwd_tiled = jax.jit(functools.partial(prototypes_forward, tm=128, tn=128, tk=128))
    out2 = fwd_tiled(x2, w2)
    jax.block_until_ready(out2)
    assert out2.shape == (M2, N2), out2.shape
    assert jnp.allclose(out2, reference_forward(x2, w2), atol=1e-3, rtol=1e-3)

    print("KERNEL_OK")
</pallas_src>

<mosaic_0001>
module attributes {stable_mosaic.version = 11 : i64} {
  func.func @_matmul_kernel_single_k(%arg0: i32, %arg1: i32, %arg2: memref<8x32xf32, #tpu.memory_space<vmem>>, %arg3: memref<16x32xf32, #tpu.memory_space<vmem>>, %arg4: memref<8x16xf32, #tpu.memory_space<vmem>>) attributes {dimension_semantics = [#tpu.dimension_semantics<parallel>, #tpu.dimension_semantics<parallel>], iteration_bounds = array<i64: 1, 1>, scalar_prefetch = 0 : i64, scratch_operands = 0 : i64, tpu.core_type = #tpu.core_type<tc>, window_params = [{transform_indices = @transform_0, window_bounds = array<i64: 8, 32>}, {transform_indices = @transform_1, window_bounds = array<i64: 16, 32>}, {transform_indices = @transform_2, window_bounds = array<i64: 8, 16>}]} {
    %c0 = arith.constant 0 : index
    %c0_0 = arith.constant 0 : index
    %0 = vector.load %arg2[%c0, %c0_0] : memref<8x32xf32, #tpu.memory_space<vmem>>, vector<8x32xf32>
    %c0_1 = arith.constant 0 : index
    %c0_2 = arith.constant 0 : index
    %1 = vector.load %arg3[%c0_1, %c0_2] : memref<16x32xf32, #tpu.memory_space<vmem>>, vector<16x32xf32>
    %cst = arith.constant dense<0.000000e+00> : vector<8x16xf32>
    %2 = tpu.matmul %0, %1, %cst {dimension_numbers = #tpu.dot_dimension_numbers<[1], [1], [0], [0], [0, 0, 1, 0], [], []>} : vector<8x32xf32>, vector<16x32xf32>, vector<8x16xf32> -> vector<8x16xf32>
    %c0_3 = arith.constant 0 : index
    %c0_4 = arith.constant 0 : index
    %3 = vector.load %arg4[%c0_3, %c0_4] : memref<8x16xf32, #tpu.memory_space<vmem>>, vector<8x16xf32>
    tpu.vector_store %arg4[%c0_3, %c0_4], %2 {strides = array<i32>} : memref<8x16xf32, #tpu.memory_space<vmem>>, vector<8x16xf32>,
    return
  }
  func.func @transform_0(%arg0: i32, %arg1: i32) -> (i32, i32) {
    %c0_i32 = arith.constant 0 : i32
    %c0_i32_0 = arith.constant 0 : i32
    return %arg0, %c0_i32 : i32, i32
  }
  func.func @transform_1(%arg0: i32, %arg1: i32) -> (i32, i32) {
    %c0_i32 = arith.constant 0 : i32
    %c0_i32_0 = arith.constant 0 : i32
    return %arg1, %c0_i32 : i32, i32
  }
  func.func @transform_2(%arg0: i32, %arg1: i32) -> (i32, i32) {
    %c0_i32 = arith.constant 0 : i32
    return %arg0, %arg1 : i32, i32
  }
}

</mosaic_0001>

<bundles_post_ra>
// kernel: prototypes_forward.1
= control target key start
LH: loop header
LB: loop body
LE: loop exit
PB: predicated region body
PF: predicated region fallthrough
CT: control target
= control target key end

     0   :  { %7 = vsyncpa [#allocation3], 0  ;;  %s302_s0 = inlined_call_operand.hbm [shape: f32[8,32], index: 0, kind: input, shape index: {}]   ;;  %s303_s1 = inlined_call_operand.hbm [shape: f32[16,32], index: 1, kind: input, shape index: {}]   ;;  %s304_s2 = inlined_call_operand.hbm [shape: f32[8,16], index: 2, kind: output, shape index: {}]  }
   0x1   :  { %8 = vsyncpa [#allocation6], 0 }
   0x2   :  { %9 = vsyncpa [#allocation4], 0  ;;  %s236_s9 = smov [#allocation2]   ;;  %s237_s11 = smov [#allocation5]  }
   0x3   :  { %s16_s10 = sshll.u32 %s236_s9, 4  ;;  %s25_s12 = sshll.u32 %s237_s11, 4  ;;  %s17_s10 = int_to_ptr.vmem [resolvable:$true] %s16_s10  ;;  %s259_s12 = int_to_ptr.vmem [resolvable:$true] %s25_s12 }
   0x4   :  { %s164_s15 = scalar_lea.hbm %s302_s0, 128 }
   0x5   :  { %p165_p0 = scmp.ne.s32.totalorder %s302_s0, %s164_s15  ;;  %p168_p1 = scmp.lt.u32.totalorder %s164_s15, %s302_s0 }
   0x7   :  { %p170_p2 = pnand %p168_p1, %p165_p0 }
   0x9   :  { %173 = shalt.err (!%p170_p2)
}
   0xa   :  { %s174_s20 = scalar_lea.vmem %s17_s10, 128  ;;  %p179_p4 = scmp.lt.s32.totalorder %s17_s10, %s17_s10 }
   0xb   :  { %p175_p3 = scmp.ne.s32.totalorder %s17_s10, %s174_s20  ;;  %p180_p5 = scmp.lt.s32.totalorder %s174_s20, %s174_s20 }
   0xd   :  { %p181_p6 = por %p180_p5, %p179_p4 }
   0xf   :  { %p182_p7 = pnand %p181_p6, %p175_p3 }
  0x11   :  { %185 = shalt.err (!%p182_p7)
}
  0x12   :  { %19 = dma.hbm_to_vmem [thread:$0]  %s302_s0, 128, %s17_s10, [#allocation3]  }
  0x13   :  { %s186_s25 = scalar_lea.hbm %s303_s1, 256 }
  0x14   :  { %p187_p8 = scmp.ne.s32.totalorder %s303_s1, %s186_s25  ;;  %p190_p9 = scmp.lt.u32.totalorder %s186_s25, %s303_s1 }
  0x16   :  { %p192_p10 = pnand %p190_p9, %p187_p8 }
  0x18   :  { %195 = shalt.err (!%p192_p10)
}
  0x19   :  { %s196_s30 = scalar_lea.vmem %s259_s12, 256  ;;  %p201_p12 = scmp.lt.s32.totalorder %s259_s12, %s259_s12 }
  0x1a   :  { %p197_p11 = scmp.ne.s32.totalorder %s259_s12, %s196_s30  ;;  %p202_p13 = scmp.lt.s32.totalorder %s196_s30, %s196_s30 }
  0x1c   :  { %p203_p0 = por %p202_p13, %p201_p12 }
  0x1e   :  { %p204_p1 = pnand %p203_p0, %p197_p11 }
  0x20   :  { %207 = shalt.err (!%p204_p1)
}
  0x21   :  { %s238_s0 = smov 128   ;;  %s239_s3 = smov 8  }
  0x22   :  { %31 = dma.hbm_to_vmem [thread:$0]  %s303_s1, 256, %s259_s12, [#allocation6], %s238_s0, %s238_s0, %s239_s3  }
  0x23   :  { %230 = dma.done.wait [#allocation3], 128  }
  0x24   :  { %231 = vsyncadd [#allocation3], 4294967168 }
  0x25   :  { %232 = dma.done.wait [#allocation6], 256  }
  0x26   :  { %233 = vsyncadd [#allocation6], 4294967040  ;;  %v240_v0 = vmov 0.0|0.0   ;;  %vm241_vm0 = vmmov 0   ;;  %v242_v1 = vmov 0.0   ;;  %vm41_vm1 = vcmask 261120  }
  0x27   :  { %152 = vmatprep.subr.bf16.mxu0 %v240_v0  ;;  %149 = vmatprep.mubr.msk.f32.mxu0 %vm241_vm0, %v242_v1  ;;  %v39_v2 = vld [vmem:[#allocation5] sm:$0xff]  ;;  %v40_v3 = vld [vmem:[#allocation5 + $0x8] sm:$0xff]  ;;  %vm154_vm2 = vmpackc.low %vm41_vm1, %vm41_vm1  ;;  %s243_s6 = smov [#allocation7]   ;;  %vm121_vm3 = vcmask 130048  }
  0x28   :  { %v153_v4 = vpack.c.bf16 %v40_v3, %v39_v2  ;;  %v38_v5 = vld [vmem:[#allocation2] sm:$0xff]  ;;  %s129_s7 = sshll.u32 %s243_s6, 4  ;;  %s130_s7 = int_to_ptr.vmem [resolvable:$true] %s129_s7 }
  0x29   :  { %s208_s1 = scalar_lea.vmem %s130_s7, 128  ;;  %p213_p3 = scmp.lt.s32.totalorder %s130_s7, %s130_s7 }
  0x2a   :  { %155 = vmatpush3.bf16.xpose.msk.msra.mxu0 %vm154_vm2, %v153_v4  ;;  %p209_p2 = scmp.ne.s32.totalorder %s130_s7, %s208_s1  ;;  %p214_p4 = scmp.lt.s32.totalorder %s208_s1, %s208_s1 }
  0x2c   :  { %p215_p5 = por %p214_p4, %p213_p3 }
  0x2e   :  { %p216_p6 = pnand %p215_p5, %p209_p2 }
  0x31   :  { %150 = vmatmul.mubr.msk.f32.vlgmr.msra.gmra.mrb[0].mxu0 %vm41_vm1, %v38_v5 }
 0x104   :  { %v117_v6 = vpop.f32.mrb[0].mxu0 }
 0x105   :  { %v151_v7 = vpop.f32.mrb[1].mxu0  ;;  %122 = vst.msk [vmem:[#allocation7] sm:$0xff] %vm121_vm3, %v117_v6 }
 0x106   :  { %219 = shalt.err (!%p216_p6)
}
 0x107   :  { %s220_s10 = scalar_lea.hbm %s304_s2, 128 }
 0x108   :  { %p221_p7 = scmp.ne.s32.totalorder %s304_s2, %s220_s10  ;;  %p224_p8 = scmp.lt.u32.totalorder %s220_s10, %s304_s2 }
 0x10a   :  { %p226_p9 = pnand %p224_p8, %p221_p7 }
 0x10c   :  { %229 = shalt.err (!%p226_p9)
}
 0x10d   :  { %132 = dma.vmem_to_hbm [thread:$0]  %s130_s7, 128, %s304_s2, [#allocation4]  }
 0x10e   :  { %234 = dma.done.wait [#allocation4], 128  }
 0x10f   :  { %235 = vsyncadd [#allocation4], 4294967168 }
 0x110   :  { %136 = vsyncpa [#allocation3], 1 }
 0x111   :  { %137 = vsyncpa [#allocation6], 1 }
 0x112   :  { %138 = vsyncpa [#allocation4], 1 }

</bundles_post_ra>
